<compile_context>
chip_gen: v6e
topology: v6e:2x2x1
jax: 0.10.0
libtpu: 0.0.40
codegen_flags: <defaults>
</compile_context>

<pallas_src>
import functools

import jax
import jax.numpy as jnp
from jax.experimental import pallas as pl
from jax.experimental.pallas import tpu as pltpu


# ------------------------------ Pallas kernel ------------------------------

def _affinity_head_kernel(x_ref, w_ref, b_ref, o_ref, *, apply_sigmoid):
    # x_ref: [TM, H] (input dtype)   -- streamed, double-buffered batch tile
    # w_ref: [1, H]  f32 (VMEM, resident across the whole grid)
    # b_ref: [1]     f32 (SMEM scalar)
    # o_ref: [1, TM]                 -- lane-dense output row
    x = x_ref[...]
    w = w_ref[...]
    # VPU multiply + XLU lane reduction instead of an N=1 MXU matmul
    # (f32 accumulation via dtype promotion against the f32 weight row).
    col = jnp.sum(x * w, axis=-1, keepdims=True) + b_ref[0]      # [TM, 1] f32
    if apply_sigmoid:
        col = jax.nn.sigmoid(col)
    # Lane-dense store: transpose the small [TM,1] column (XLU work, hidden
    # under the HBM-bound stream) so the store is an unmasked row of lanes.
    o_ref[...] = jnp.transpose(col).astype(o_ref.dtype)          # [1, TM]


# ------------------------------ tiling helpers ------------------------------

def _round_up(n, m):
    return ((n + m - 1) // m) * m


def _cdiv(a, b):
    return (a + b - 1) // b


# Bounds the lane-sparse [TM,1] reduce intermediate / its transpose, not HBM
# streaming efficiency (the byte budget below is the primary sizing knob).
_ROW_CAP = 8192


def _chip_budgets():
    """(per-tile X byte budget, vmem_limit_bytes), sized per TPU generation."""
    try:
        vmem_cap = int(pltpu.get_tpu_info().vmem_capacity_bytes)
    except Exception:
        vmem_cap = 64 << 20                 # assume smallest (v7x-class) VMEM
    if vmem_cap >= (128 << 20):             # v5e / v6e: 128 MiB physical VMEM
        return 12 << 20, 64 << 20
    return 8 << 20, 44 << 20                # v7x-class: 64 MiB physical per TC


def _sublane_multiple(itemsize):
    # 8 rows for 4-byte dtypes, 16 for bf16/fp16, 32 for int8/fp8 (packing).
    return 8 * max(1, 4 // max(1, itemsize))


def _pick_tm(B, H, itemsize, per_tile_bytes):
    sub = _sublane_multiple(itemsize)
    b_pad = _round_up(B, sub)
    rows = per_tile_bytes // max(1, H * itemsize)      # VMEM byte budget -> rows
    rows = max(sub, min(rows, _ROW_CAP))
    # Guarantee >= 2 grid blocks when the batch allows it (v7x megacore).
    rows = min(rows, max(sub, _cdiv(B, 2)))
    if rows >= b_pad or b_pad <= 128:
        return b_pad                                   # single grid block
    # Multi-block tiles are lane-aligned (x128) so each (1, TM) output block
    # satisfies the lane-tiling constraint and stores stay unmasked.
    return max(128, (rows // 128) * 128)


# ------------------------------ Python wrapper ------------------------------

def _run_head(x, w_row, b_vec, *, apply_sigmoid, tm=None):
    B, H = x.shape
    itemsize = jnp.dtype(x.dtype).itemsize
    per_tile_bytes, vmem_limit = _chip_budgets()
    sub = _sublane_multiple(itemsize)
    b_pad = _round_up(B, sub)

    if tm is None:
        tm = _pick_tm(B, H, itemsize, per_tile_bytes)
    else:
        tm = max(sub, _round_up(int(tm), sub))
        if tm < b_pad:
            tm = max(128, _round_up(tm, 128))          # keep out blocks lane-aligned
        else:
            tm = b_pad

    num_tiles = _cdiv(B, tm)
    padded = num_tiles * tm

    kernel = functools.partial(_affinity_head_kernel, apply_sigmoid=apply_sigmoid)
    out = pl.pallas_call(
        kernel,
        out_shape=jax.ShapeDtypeStruct((1, padded), x.dtype),
        grid_spec=pltpu.PrefetchScalarGridSpec(
            num_scalar_prefetch=0,
            grid=(num_tiles,),
            in_specs=[
                # Streamed, double-buffered X tiles (byte-budget sized).
                pl.BlockSpec((tm, H), lambda i: (i, 0)),
                # Resident effective weight row (constant index -> no re-DMA).
                pl.BlockSpec((1, H), lambda i: (0, 0)),
                # Scalar bias in SMEM.
                pl.BlockSpec(memory_space=pltpu.MemorySpace.SMEM),
            ],
            # Lane-dense output: one (1, TM) row per grid step.
            out_specs=pl.BlockSpec((1, tm), lambda i: (0, i)),
        ),
        compiler_params=pltpu.CompilerParams(
            # Batch tiles are independent -> shard across v7x's 2 TensorCores.
            dimension_semantics=("parallel",),
            vmem_limit_bytes=int(vmem_limit),
        ),
        cost_estimate=pl.CostEstimate(
            flops=2 * B * H,
            transcendentals=(B if apply_sigmoid else 0),
            bytes_accessed=B * H * itemsize + H * 4 + 4 + B * itemsize,
        ),
    )(x, w_row, b_vec)

    # Padded lanes (ragged final block) carry unspecified values -> slice off.
    return out[0, :B].reshape(B, 1)


def trafica_affinity_predictor(x, params, predict_type="regression", tm=None):
    """x: [B, H]. params: dict of weights (see init_params). Returns [B, 1]."""
    x = jnp.asarray(x)
    if predict_type == "regression":
        w1, b1, w2, b2 = params["w1"], params["b1"], params["w2"], params["b2"]
        # Exact algebraic fold of the two Linears (no activation between them):
        #   X @ W1 @ W2 + (b1 @ W2 + b2)
        w_row = (w1 @ w2).reshape(1, -1).astype(jnp.float32)    # [1, H]
        b_vec = (b1 @ w2 + b2).reshape(1).astype(jnp.float32)   # [1]
        return _run_head(x, w_row, b_vec, apply_sigmoid=False, tm=tm)
    elif predict_type == "classification":
        w, b = params["w"], params["b"]
        w_row = w.reshape(1, -1).astype(jnp.float32)            # [1, H]
        b_vec = b.reshape(1).astype(jnp.float32)                # [1]
        return _run_head(x, w_row, b_vec, apply_sigmoid=True, tm=tm)
    else:
        raise TypeError("predict_type should be regression or classification")


def init_params(key, h_size, predict_type="regression"):
    """Deterministic synthetic parameter init (same shapes as the torch module).

    Weights are stored as [in_features, out_features] (transposed vs torch)."""
    if predict_type == "regression":
        k1, k2, k3, k4 = jax.random.split(key, 4)
        half = h_size // 2
        return {
            "w1": jax.random.normal(k1, (h_size, half), jnp.float32) * 0.02,
            "b1": jax.random.normal(k2, (1, half), jnp.float32) * 0.02,
            "w2": jax.random.normal(k3, (half, 1), jnp.float32) * 0.02,
            "b2": jax.random.normal(k4, (1, 1), jnp.float32) * 0.02,
        }
    else:
        k1, k2 = jax.random.split(key, 2)
        return {
            "w": jax.random.normal(k1, (h_size, 1), jnp.float32) * 0.02,
            "b": jax.random.normal(k2, (1, 1), jnp.float32) * 0.02,
        }


# Pure-JAX reference (un-folded, matches the torch module op-for-op).
def _reference(x, params, predict_type="regression"):
    if predict_type == "regression":
        h1 = x @ params["w1"] + params["b1"]
        return h1 @ params["w2"] + params["b2"]
    else:
        return jax.nn.sigmoid(x @ params["w"] + params["b"])


if __name__ == "__main__":
    key = jax.random.PRNGKey(0)
    kx, kp_r, kp_c, kx2, kx3 = jax.random.split(key, 5)

    B, H = 8, 32  # small shapes; H is the `h_size` hidden dim
    x = jax.random.normal(kx, (B, H), jnp.float32)

    # regression (default path of the module)
    params_r = init_params(kp_r, H, "regression")
    out_r = jax.block_until_ready(trafica_affinity_predictor(x, params_r, "regression"))
    ref_r = _reference(x, params_r, "regression")
    assert out_r.shape == (B, 1)
    assert jnp.allclose(out_r, ref_r, atol=1e-5), "regression mismatch"

    # classification path (sigmoid head)
    params_c = init_params(kp_c, H, "classification")
    out_c = jax.block_until_ready(trafica_affinity_predictor(x, params_c, "classification"))
    ref_c = _reference(x, params_c, "classification")
    assert out_c.shape == (B, 1)
    assert jnp.allclose(out_c, ref_c, atol=1e-5), "classification mismatch"

    # multi-tile path: tm -> 128, grid of 3 with a ragged final block;
    # exercises the lane-dense [1, num_tiles*TM] output layout + wrapper slice.
    B2 = 300
    x2 = jax.random.normal(kx2, (B2, H), jnp.float32)
    out_m = jax.block_until_ready(trafica_affinity_predictor(x2, params_r, "regression"))
    ref_m = _reference(x2, params_r, "regression")
    assert out_m.shape == (B2, 1)
    assert jnp.allclose(out_m, ref_m, atol=1e-5), "multi-tile regression mismatch"

    # bf16 input exercises the 16-row sublane-packing rounding of TM.
    B3 = 20
    x3 = jax.random.normal(kx3, (B3, H), jnp.float32).astype(jnp.bfloat16)
    out_b = jax.block_until_ready(trafica_affinity_predictor(x3, params_r, "regression"))
    ref_b = _reference(x3.astype(jnp.float32), params_r, "regression")
    assert out_b.shape == (B3, 1)
    assert jnp.allclose(out_b.astype(jnp.float32), ref_b, atol=3e-3), "bf16 regression mismatch"

    print("KERNEL_OK")
</pallas_src>

<mosaic_0001>
module attributes {stable_mosaic.version = 11 : i64} {
  func.func @_affinity_head_kernel(%arg0: i32, %arg1: memref<8x32xf32, #tpu.memory_space<vmem>>, %arg2: memref<1x32xf32, #tpu.memory_space<vmem>>, %arg3: memref<1xf32, #tpu.memory_space<smem>>, %arg4: memref<1x8xf32, #tpu.memory_space<vmem>>) attributes {dimension_semantics = [#tpu.dimension_semantics<parallel>], iteration_bounds = array<i64: 1>, scalar_prefetch = 0 : i64, scratch_operands = 0 : i64, tpu.core_type = #tpu.core_type<tc>, window_params = [{transform_indices = @transform_0, window_bounds = array<i64: 8, 32>}, {pipeline_mode = #tpu.pipeline_mode<synchronous>, transform_indices = @transform_1, window_bounds = array<i64: 1, 32>}, {transform_indices = @transform_2, window_bounds = array<i64: 1>}, {transform_indices = @transform_3, window_bounds = array<i64: 1, 8>}]} {
    %c0 = arith.constant 0 : index
    %c0_0 = arith.constant 0 : index
    %0 = vector.load %arg1[%c0, %c0_0] : memref<8x32xf32, #tpu.memory_space<vmem>>, vector<8x32xf32>
    %c0_1 = arith.constant 0 : index
    %c0_2 = arith.constant 0 : index
    %1 = vector.load %arg2[%c0_1, %c0_2] : memref<1x32xf32, #tpu.memory_space<vmem>>, vector<1x32xf32>
    %2 = vector.broadcast %1 : vector<1x32xf32> to vector<8x32xf32>
    %3 = arith.mulf %0, %2 : vector<8x32xf32>
    %cst = arith.constant dense<0.000000e+00> : vector<8xf32>
    %4 = vector.multi_reduction <add>, %3, %cst [1] : vector<8x32xf32> to vector<8xf32>
    %5 = vector.shape_cast %4 : vector<8xf32> to vector<8x1xf32>
    %c0_3 = arith.constant 0 : index
    %6 = memref.load %arg3[%c0_3] : memref<1xf32, #tpu.memory_space<smem>>
    %7 = vector.broadcast %6 : f32 to vector<8x1xf32>
    %8 = arith.addf %5, %7 : vector<8x1xf32>
    %9 = tpu.transpose %8, [1, 0] : vector<8x1xf32> -> vector<1x8xf32>
    %c0_4 = arith.constant 0 : index
    %c0_5 = arith.constant 0 : index
    %10 = vector.load %arg4[%c0_4, %c0_5] : memref<1x8xf32, #tpu.memory_space<vmem>>, vector<1x8xf32>
    tpu.vector_store %arg4[%c0_4, %c0_5], %9 {strides = array<i32>} : memref<1x8xf32, #tpu.memory_space<vmem>>, vector<1x8xf32>,
    return
  }
  func.func @transform_0(%arg0: i32) -> (i32, i32) {
    %c0_i32 = arith.constant 0 : i32
    %c0_i32_0 = arith.constant 0 : i32
    return %arg0, %c0_i32 : i32, i32
  }
  func.func @transform_1(%arg0: i32) -> (i32, i32) {
    %c0_i32 = arith.constant 0 : i32
    %c0_i32_0 = arith.constant 0 : i32
    %c0_i32_1 = arith.constant 0 : i32
    return %c0_i32, %c0_i32_0 : i32, i32
  }
  func.func @transform_2(%arg0: i32) -> i32 {
    %c0_i32 = arith.constant 0 : i32
    %c0_i32_0 = arith.constant 0 : i32
    return %c0_i32 : i32
  }
  func.func @transform_3(%arg0: i32) -> (i32, i32) {
    %c0_i32 = arith.constant 0 : i32
    %c0_i32_0 = arith.constant 0 : i32
    return %c0_i32, %arg0 : i32, i32
  }
}

</mosaic_0001>

<bundles_post_ra>
// kernel: tpu_custom_call.1
= control target key start
LH: loop header
LB: loop body
LE: loop exit
PB: predicated region body
PF: predicated region fallthrough
CT: control target
= control target key end

     0   :  { %9 = vsyncpa [#allocation4], 0  ;;  %s175_s0 = inlined_call_operand.hbm [shape: f32[8,32], index: 0, kind: input, shape index: {}]   ;;  %s176_s1 = inlined_call_operand.vmem [shape: f32[1,32], index: 1, kind: input, shape index: {}]   ;;  %s177_s2 = inlined_call_operand.<no memory space> [shape: f32[1], index: 2, kind: input, shape index: {}]   ;;  %s178_s3 = inlined_call_operand.hbm [shape: f32[1,8], index: 3, kind: output, shape index: {}]  }
   0x1   :  { %10 = vsyncpa [#allocation5], 0  ;;  %s141_s12 = smov [#allocation3]  }
   0x2   :  { %s17_s13 = sshll.u32 %s141_s12, 4  ;;  %s18_s13 = int_to_ptr.vmem [resolvable:$true] %s17_s13 }
   0x3   :  { %s105_s14 = scalar_lea.vmem %s18_s13, 128  ;;  %p110_p1 = scmp.lt.s32.totalorder %s18_s13, %s18_s13 }
   0x4   :  { %p106_p0 = scmp.ne.s32.totalorder %s18_s13, %s105_s14  ;;  %p111_p2 = scmp.lt.s32.totalorder %s105_s14, %s105_s14 }
   0x6   :  { %p112_p3 = por %p111_p2, %p110_p1 }
   0x8   :  { %p113_p4 = pnand %p112_p3, %p106_p0 }
   0xa   :  { %116 = shalt.err (!%p113_p4)
}
   0xb   :  { %20 = dma.hbm_to_vmem [thread:$0]  %s175_s0, 128, %s18_s13, [#allocation4]  }
   0xc   :  { %137 = dma.done.wait [#allocation4], 128  }
   0xd   :  { %138 = vsyncadd [#allocation4], 4294967168  ;;  %v28_v0 = vld [vmem:[#allocation3] sm:$0xff]  ;;  %vm37_vm0 = vcmask 261120   ;;  %v42_v4 = vstv %s177_s2  ;;  %s142_s21 = smov [#allocation6]   ;;  %vm76_vm1 = vcmask 57344  }
   0xe   :  { %v93_v1 = vld [vmem:[%s176_s1] ss:$0 sm:$0xff]  ;;  %s84_s0 = sshll.u32 %s142_s21, 4  ;;  %s85_s0 = int_to_ptr.vmem [resolvable:$true] %s84_s0 }
   0xf   :  { %v36_v2 = vmul.f32 %v93_v1, %v28_v0  ;;  %s117_s22 = scalar_lea.vmem %s85_s0, 16  ;;  %s121_s1 = scalar_lea.vmem %s85_s0, 32 }
  0x10   :  { %p118_p5 = scmp.ne.s32.totalorder %s85_s0, %s117_s22  ;;  %p122_p6 = scmp.lt.s32.totalorder %s85_s0, %s85_s0 }
  0x11   :  { %v38_v3 = vsel %vm37_vm0, %v36_v2, 0.0  ;;  %p123_p7 = scmp.lt.s32.totalorder %s121_s1, %s117_s22 }
  0x12   :  { %39 = vadd.xlane.f32.xlu0 %v38_v3 }
  0x13   :  { %p124_p8 = por %p123_p7, %p122_p6 }
  0x15   :  { %p125_p9 = pnand %p124_p8, %p118_p5 }
  0x9b   :  { %v40_v5 = vpop.xlane.xlu0 %39 }
  0x9c   :  { %v43_v6 = vadd.f32 %v42_v4, %v40_v5 }
  0x9e   :  { %44 = vxpose.xlu0.b32.start.end [1/1] (short) (narrow) %v43_v6, 8 }
 0x11a   :  { %v60_v7 = vpop.trf.xlu0 }
 0x11b   :  { %77 = vst.msk [vmem:[#allocation6] sm:$0x1] %vm76_vm1, %v60_v7 }
 0x11c   :  { %128 = shalt.err (!%p125_p9)
}
 0x11d   :  { %87 = dma.vmem_to_hbm [thread:$0]  %s85_s0, 16, %s178_s3, [#allocation5]  }
 0x11e   :  { %139 = dma.done.wait [#allocation5], 16  }
 0x11f   :  { %140 = vsyncadd [#allocation5], 4294967280 }
 0x120   :  { %91 = vsyncpa [#allocation4], 1 }
 0x121   :  { %92 = vsyncpa [#allocation5], 1 }

</bundles_post_ra>
